<compile_context>
chip_gen: v5e
topology: v5e:2x2
jax: 0.10.0
libtpu: 0.0.40
codegen_flags: <defaults>
</compile_context>

<pallas_src>
import functools

import jax
import jax.numpy as jnp
from jax import lax
from jax.experimental import pallas as pl
from jax.experimental.pallas import tpu as pltpu


def _round_up(x, m):
    return ((x + m - 1) // m) * m


def _vmem_capacity_bytes():
    try:
        return int(pltpu.get_tpu_info().vmem_capacity_bytes)
    except Exception:
        return 64 * 1024 * 1024            # conservative default (v7x per-TC VMEM)


def _largest_divisor(n, candidates, fits=lambda c: True):
    """Largest candidate that divides n and fits the VMEM budget (fallback: smallest divisor)."""
    for c in sorted(set(candidates), reverse=True):
        if 0 < c <= n and n % c == 0 and fits(c):
            return c
    for c in sorted(set(candidates)):
        if 0 < c <= n and n % c == 0:
            return c
    return n


# ----------------------------------------------------------------------------
# Kernel A: fused LSTM recurrence + LayerNorm (one batch tile per grid step)
# ----------------------------------------------------------------------------
def lstm_norm_kernel(emb_ref, wih_ref, whh_ref, bias_ref, norm_ref, xproj_scr,
                     *, n_chunks, chunk, inv_count):
    """emb_ref   : (T, tB, Hp)      time-major embedded inputs (H padded to 128)
    wih_ref   : (Hp, 4Hp)         whole-array VMEM: padded W_ih^T, gate blocks 128-aligned
    whh_ref   : (Hp, 4Hp)         whole-array VMEM: padded W_hh^T, same layout
    bias_ref  : (1, 4Hp)          whole-array VMEM: padded (b_ih + b_hh)
    norm_ref  : (T, tB, Hp)       output block; holds raw h_t during the loop, then is
                                  normalized in place (no separate hidden-state scratch)
    xproj_scr : (chunk, tB, 4Hp)  VMEM scratch for the chunked, hoisted input projection
    inv_count : 1 / (T * H_real)  LayerNorm divisor over the *unpadded* (T, H) extent
    """
    T, B, H = emb_ref.shape
    wih = wih_ref[...]
    whh = whh_ref[...]
    bias = bias_ref[...]

    def chunk_body(ci, carry):
        h0, c0, s0, ss0 = carry
        t0 = pl.multiple_of(ci * chunk, chunk)
        # Hoisted input projection for this chunk: one tall MXU matmul (+ bias broadcast)
        # instead of `chunk` skinny matmuls on the serial critical path; the scratch stays
        # O(chunk * tB * 4Hp) instead of O(T * tB * 4Hp).
        x_chunk = emb_ref[pl.ds(t0, chunk)].reshape(chunk * B, H)
        xproj_scr[...] = (jnp.dot(x_chunk, wih, preferred_element_type=jnp.float32)
                          + bias).reshape(chunk, B, 4 * H)

        def step(tl, carry2):
            h, c, s, ss = carry2
            gates = xproj_scr[tl] + jnp.dot(h, whh, preferred_element_type=jnp.float32)
            # 128-aligned gate slices (PyTorch gate order i, f, g, o) -> free views.
            i_g = jax.nn.sigmoid(gates[:, 0 * H:1 * H])
            f_g = jax.nn.sigmoid(gates[:, 1 * H:2 * H])
            g_g = jnp.tanh(gates[:, 2 * H:3 * H])
            o_g = jax.nn.sigmoid(gates[:, 3 * H:4 * H])
            c_new = f_g * c + i_g * g_g
            h_new = o_g * jnp.tanh(c_new)
            norm_ref[t0 + tl] = h_new          # raw hidden state, normalized in epilogue
            # Online LayerNorm statistics (padded hidden lanes are exactly zero, so sums
            # over the padded width equal sums over the real width).
            s = s + jnp.sum(h_new, axis=1, keepdims=True)
            ss = ss + jnp.sum(h_new * h_new, axis=1, keepdims=True)
            return (h_new, c_new, s, ss)

        return lax.fori_loop(0, chunk, step, (h0, c0, s0, ss0))

    zeros_bh = jnp.zeros((B, H), jnp.float32)
    zeros_b1 = jnp.zeros((B, 1), jnp.float32)
    _, _, s, ss = lax.fori_loop(0, n_chunks, chunk_body,
                                (zeros_bh, zeros_bh, zeros_b1, zeros_b1))

    # LayerNorm over each batch element's real (T, H) extent (eps=1e-5, no affine),
    # matching F.layer_norm(lstm_out, (T, H), weight=None, eps=1e-5).
    # One-pass E[x^2]-mean^2 kept in f32; adequate at these magnitudes (see notes).
    mean = s * inv_count                                   # (tB, 1)
    var = ss * inv_count - mean * mean                     # (tB, 1)
    inv_std = lax.rsqrt(var + 1e-5)                        # (tB, 1)
    norm_ref[...] = (norm_ref[...] - mean.reshape(1, B, 1)) * inv_std.reshape(1, B, 1)
    # Dropout(p=0) is the identity.


# ----------------------------------------------------------------------------
# Kernel B: output projection, one (tR, Hp) @ (Hp, tV) MXU tile per grid step
# ----------------------------------------------------------------------------
def output_proj_kernel(x_ref, w_ref, b_ref, o_ref):
    o_ref[...] = (jnp.dot(x_ref[...], w_ref[...],
                          preferred_element_type=jnp.float32)
                  + b_ref[...]).astype(o_ref.dtype)


def init_params(key, vocab_size, rnn_size):
    k = jax.random.split(key, 6)
    s = 0.1
    return {
        "embedding": jax.random.normal(k[0], (vocab_size, rnn_size), jnp.float32) * s,
        "w_ih": jax.random.normal(k[1], (4 * rnn_size, rnn_size), jnp.float32) * s,
        "w_hh": jax.random.normal(k[2], (4 * rnn_size, rnn_size), jnp.float32) * s,
        "b_ih": jax.random.normal(k[3], (4 * rnn_size,), jnp.float32) * s,
        "b_hh": jax.random.normal(k[4], (4 * rnn_size,), jnp.float32) * s,
        "w_out": jax.random.normal(k[5], (vocab_size, rnn_size), jnp.float32) * s,
        "b_out": jnp.zeros((vocab_size,), jnp.float32),
    }


def language_model_forward(tokens, params):
    """tokens: (B, T) int32 -> logits (B, T, V), matching the PyTorch module."""
    B, T = tokens.shape
    V, H = params["w_out"].shape

    Hp = _round_up(H, 128)      # lane-align hidden dim / gate blocks
    Vp = _round_up(V, 128)      # lane-dense logits stores
    Bp = _round_up(B, 8)        # sublane-align batch
    f32 = jnp.float32

    # Explicit VMEM budgeting so tile choices adapt to v5e/v6e (128 MiB) vs v7x (64 MiB),
    # and so the scoped-VMEM default (16/32 MiB) never rejects otherwise-legal tiles.
    vmem_cap = _vmem_capacity_bytes()
    vmem_budget = int(vmem_cap * 0.70)      # headroom for compiler-internal scratch
    vmem_limit = int(vmem_cap * 0.90)

    # ---- glue: embedding gather straight into time-major + zero padding --------
    # TODO(synk): move the gather in-kernel (tokens via scalar prefetch, per-row DMA from an
    # HBM-resident table) to save one HBM round trip over the embedded activations.
    emb_tm = params["embedding"].astype(f32)[tokens.T]             # (T, B, H)
    emb_tm = jnp.pad(emb_tm, ((0, 0), (0, Bp - B), (0, Hp - H)))   # (T, Bp, Hp)

    # ---- pack weights: transpose + pad, gate blocks at 128-aligned offsets -----
    # (In a real deployment this packing is done once, outside the forward pass.)
    w_ih_t = params["w_ih"].astype(f32).T                          # (H, 4H)
    w_hh_t = params["w_hh"].astype(f32).T
    b_gate = (params["b_ih"] + params["b_hh"]).astype(f32)

    wih_p = jnp.zeros((Hp, 4 * Hp), f32)
    whh_p = jnp.zeros((Hp, 4 * Hp), f32)
    bias_p = jnp.zeros((1, 4 * Hp), f32)
    for k in range(4):                                             # gates i, f, g, o
        wih_p = wih_p.at[:H, k * Hp:k * Hp + H].set(w_ih_t[:, k * H:(k + 1) * H])
        whh_p = whh_p.at[:H, k * Hp:k * Hp + H].set(w_hh_t[:, k * H:(k + 1) * H])
        bias_p = bias_p.at[0, k * Hp:k * Hp + H].set(b_gate[k * H:(k + 1) * H])

    # f32 projection weights kept to stay within the 1e-4 reference tolerance.
    # TODO(synk): bf16 W_out / W_ih / W_hh (f32 accumulate) halves MXU passes and HBM/VMEM
    # on v6e/v7x, but requires intentionally relaxing the logits tolerance.
    wout_p = jnp.zeros((Hp, Vp), f32).at[:H, :V].set(params["w_out"].astype(f32).T)
    bout_p = jnp.zeros((1, Vp), f32).at[0, :V].set(params["b_out"].astype(f32))

    # ---- kernel A: LSTM recurrence + LayerNorm, gridded over batch tiles -------
    chunk = _largest_divisor(T, (64, 32, 16, 8, 4, 2, 1))          # time-chunk for xproj
    weight_bytes = 2 * (Hp * 4 * Hp * 4) + 4 * Hp * 4              # single-buffered weights

    def _fits_a(tb):
        blk = T * tb * Hp * 4
        need = (2 * blk                        # embedded-input block (double-buffered)
                + 2 * blk                      # output block (double-buffered)
                + chunk * tb * 4 * Hp * 4      # chunked xproj scratch
                + weight_bytes)
        return need <= vmem_budget

    # Keep >= 2 batch tiles when the batch allows it so both v7x TensorCores get work.
    tb_cap = max(8, (Bp // 2) // 8 * 8) if Bp >= 16 else Bp
    tB = _largest_divisor(Bp, tuple(c for c in (256, 128, 64, 32, 16, 8) if c <= tb_cap),
                          _fits_a)

    norm_tm = pl.pallas_call(
        functools.partial(lstm_norm_kernel, n_chunks=T // chunk, chunk=chunk,
                          inv_count=1.0 / float(T * H)),
        out_shape=jax.ShapeDtypeStruct((T, Bp, Hp), f32),
        grid=(Bp // tB,),
        in_specs=[
            pl.BlockSpec((T, tB, Hp), lambda b: (0, b, 0)),
            # Grid-invariant weights: whole-array VMEM residents (one copy each, no
            # BlockSpec double-buffering) — the key VMEM saver for v7x.
            pl.BlockSpec(memory_space=pltpu.MemorySpace.VMEM),
            pl.BlockSpec(memory_space=pltpu.MemorySpace.VMEM),
            pl.BlockSpec(memory_space=pltpu.MemorySpace.VMEM),
        ],
        out_specs=pl.BlockSpec((T, tB, Hp), lambda b: (0, b, 0)),
        scratch_shapes=[pltpu.VMEM((chunk, tB, 4 * Hp), f32)],
        compiler_params=pltpu.CompilerParams(
            dimension_semantics=("parallel",),
            vmem_limit_bytes=vmem_limit),
    )(emb_tm, wih_p, whh_p, bias_p)

    # Batch-first re-layout of the SMALL normalized activations (Bp*T*Hp elements);
    # the large logits tensor is written batch-first directly by kernel B.
    # TODO(synk): fold this transpose into kernel A/B once Mosaic portably supports the
    # needed relayout (dynamic second-minor stores / (1,0,2) transposes); this pass is
    # small next to kernel B's W_out / logits HBM traffic.
    norm_bf = jnp.transpose(norm_tm, (1, 0, 2)).reshape(Bp * T, Hp)

    # ---- kernel B: output projection, tiled over (rows, vocab), all-parallel ---
    BT = Bp * T
    tV = _largest_divisor(Vp, (512, 256, 128))

    def _fits_b(tr):
        need = (2 * tr * Hp * 4            # activation row tile
                + 2 * Hp * tV * 4          # W_out tile
                + 2 * tV * 4               # bias tile
                + 2 * tr * tV * 4)         # logits tile
        return need <= vmem_budget

    # Large row tiles: with the vocab axis iterating fastest, W_out is re-streamed from
    # HBM once per row tile, so tR is the lever that bounds weight traffic.
    tR = _largest_divisor(BT, (BT, 4096, 2048, 1024, 512, 256, 128, 64, 32, 16, 8),
                          _fits_b)

    logits_flat = pl.pallas_call(
        output_proj_kernel,
        out_shape=jax.ShapeDtypeStruct((BT, Vp), f32),
        grid=(BT // tR, Vp // tV),
        in_specs=[
            pl.BlockSpec((tR, Hp), lambda r, j: (r, 0)),
            pl.BlockSpec((Hp, tV), lambda r, j: (0, j)),
            pl.BlockSpec((1, tV), lambda r, j: (0, j)),
        ],
        out_specs=pl.BlockSpec((tR, tV), lambda r, j: (r, j)),
        compiler_params=pltpu.CompilerParams(
            dimension_semantics=("parallel", "parallel"),
            vmem_limit_bytes=vmem_limit),
    )(norm_bf, wout_p, bout_p)

    # Strip padding: (Bp*T, Vp) -> (B, T, V), batch-first (no logits transpose).
    return logits_flat.reshape(Bp, T, Vp)[:B, :, :V]


def reference_forward(tokens, params):
    """Pure-JAX reference mirroring the PyTorch forward exactly."""
    emb = params["embedding"][tokens]                        # (B, T, H)
    B, T, H = emb.shape
    W_ih, W_hh = params["w_ih"], params["w_hh"]
    b = params["b_ih"] + params["b_hh"]

    def step(carry, x_t):
        h, c = carry
        gates = x_t @ W_ih.T + h @ W_hh.T + b
        i = jax.nn.sigmoid(gates[:, 0 * H:1 * H])
        f = jax.nn.sigmoid(gates[:, 1 * H:2 * H])
        g = jnp.tanh(gates[:, 2 * H:3 * H])
        o = jax.nn.sigmoid(gates[:, 3 * H:4 * H])
        c = f * c + i * g
        h = o * jnp.tanh(c)
        return (h, c), h

    xs = jnp.transpose(emb, (1, 0, 2))
    _, hs = lax.scan(step, (jnp.zeros((B, H)), jnp.zeros((B, H))), xs)
    lstm_out = jnp.transpose(hs, (1, 0, 2))                  # (B, T, H)
    mean = jnp.mean(lstm_out, axis=(1, 2), keepdims=True)
    var = jnp.mean(jnp.square(lstm_out - mean), axis=(1, 2), keepdims=True)
    norm = (lstm_out - mean) / jnp.sqrt(var + 1e-5)
    return norm @ params["w_out"].T + params["b_out"]


if __name__ == "__main__":
    vocab_size = 64
    rnn_size = 32
    batch = 2
    seq = 8

    key = jax.random.PRNGKey(0)
    pkey, xkey = jax.random.split(key)
    params = init_params(pkey, vocab_size, rnn_size)
    tokens = jax.random.randint(xkey, (batch, seq), 0, vocab_size, dtype=jnp.int32)

    forward = jax.jit(language_model_forward)
    logits = jax.block_until_ready(forward(tokens, params))
    ref = jax.block_until_ready(reference_forward(tokens, params))

    assert logits.shape == (batch, seq, vocab_size), logits.shape
    assert jnp.allclose(logits, ref, atol=1e-4, rtol=1e-4), "mismatch vs reference"
    print("KERNEL_OK")
</pallas_src>

<mosaic_0001>
module attributes {stable_mosaic.version = 11 : i64} {
  func.func @lstm_norm_kernel(%arg0: i32, %arg1: memref<8x8x128xf32, #tpu.memory_space<vmem>>, %arg2: memref<128x512xf32, #tpu.memory_space<vmem>>, %arg3: memref<128x512xf32, #tpu.memory_space<vmem>>, %arg4: memref<1x512xf32, #tpu.memory_space<vmem>>, %arg5: memref<8x8x128xf32, #tpu.memory_space<vmem>>, %arg6: memref<8x8x512xf32, #tpu.memory_space<vmem>>) attributes {dimension_semantics = [#tpu.dimension_semantics<parallel>], iteration_bounds = array<i64: 1>, scalar_prefetch = 0 : i64, scratch_operands = 1 : i64, tpu.core_type = #tpu.core_type<tc>, window_params = [{transform_indices = @transform_0, window_bounds = array<i64: 8, 8, 128>}, {pipeline_mode = #tpu.pipeline_mode<synchronous>, transform_indices = @transform_1, window_bounds = array<i64: 128, 512>}, {pipeline_mode = #tpu.pipeline_mode<synchronous>, transform_indices = @transform_2, window_bounds = array<i64: 128, 512>}, {pipeline_mode = #tpu.pipeline_mode<synchronous>, transform_indices = @transform_3, window_bounds = array<i64: 1, 512>}, {transform_indices = @transform_4, window_bounds = array<i64: 8, 8, 128>}]} {
    %c0 = arith.constant 0 : index
    %c0_0 = arith.constant 0 : index
    %0 = vector.load %arg2[%c0, %c0_0] : memref<128x512xf32, #tpu.memory_space<vmem>>, vector<128x512xf32>
    %c0_1 = arith.constant 0 : index
    %c0_2 = arith.constant 0 : index
    %1 = vector.load %arg3[%c0_1, %c0_2] : memref<128x512xf32, #tpu.memory_space<vmem>>, vector<128x512xf32>
    %c0_3 = arith.constant 0 : index
    %c0_4 = arith.constant 0 : index
    %2 = vector.load %arg4[%c0_3, %c0_4] : memref<1x512xf32, #tpu.memory_space<vmem>>, vector<1x512xf32>
    %cst = arith.constant 0.000000e+00 : f32
    %3 = vector.broadcast %cst : f32 to vector<8x128xf32>
    %cst_5 = arith.constant 0.000000e+00 : f32
    %4 = vector.broadcast %cst_5 : f32 to vector<8x1xf32>
    %c0_i32 = arith.constant 0 : i32
    %c8_i32 = arith.constant 8 : i32
    %5 = arith.muli %c0_i32, %c8_i32 : i32
    %6 = tpu.assume_multiple %5, 8 : i32
    %7 = arith.index_cast %6 : i32 to index
    %c0_6 = arith.constant 0 : index
    %c0_7 = arith.constant 0 : index
    %8 = vector.load %arg1[%7, %c0_6, %c0_7] : memref<8x8x128xf32, #tpu.memory_space<vmem>>, vector<8x8x128xf32>
    %9 = vector.shape_cast %8 : vector<8x8x128xf32> to vector<64x128xf32>
    %cst_8 = arith.constant dense<0.000000e+00> : vector<64x512xf32>
    %10 = tpu.matmul %9, %0, %cst_8 {dimension_numbers = #tpu.dot_dimension_numbers<[1], [0], [0], [1], [0, 0, 1, 1], [], []>} : vector<64x128xf32>, vector<128x512xf32>, vector<64x512xf32> -> vector<64x512xf32>
    %11 = vector.broadcast %2 : vector<1x512xf32> to vector<64x512xf32>
    %12 = arith.addf %10, %11 : vector<64x512xf32>
    %13 = vector.shape_cast %12 : vector<64x512xf32> to vector<8x8x512xf32>
    %c0_9 = arith.constant 0 : index
    %c0_10 = arith.constant 0 : index
    %c0_11 = arith.constant 0 : index
    %14 = vector.load %arg6[%c0_9, %c0_10, %c0_11] : memref<8x8x512xf32, #tpu.memory_space<vmem>>, vector<8x8x512xf32>
    tpu.vector_store %arg6[%c0_9, %c0_10, %c0_11], %13 {strides = array<i32>} : memref<8x8x512xf32, #tpu.memory_space<vmem>>, vector<8x8x512xf32>,
    %c0_i32_12 = arith.constant 0 : i32
    %c8_i32_13 = arith.constant 8 : i32
    %15 = arith.addi %c0_i32_12, %c8_i32_13 : i32
    %c1_i32 = arith.constant 1 : i32
    %16:4 = scf.for %arg7 = %c0_i32_12 to %15 step %c1_i32 iter_args(%arg8 = %3, %arg9 = %3, %arg10 = %4, %arg11 = %4) -> (vector<8x128xf32>, vector<8x128xf32>, vector<8x1xf32>, vector<8x1xf32>)  : i32 {
      %34 = arith.index_cast %arg7 : i32 to index
      %c0_25 = arith.constant 0 : index
      %c0_26 = arith.constant 0 : index
      %35 = vector.load %arg6[%34, %c0_25, %c0_26] : memref<8x8x512xf32, #tpu.memory_space<vmem>>, vector<1x8x512xf32>
      %36 = vector.shape_cast %35 : vector<1x8x512xf32> to vector<8x512xf32>
      %cst_27 = arith.constant dense<0.000000e+00> : vector<8x512xf32>
      %37 = tpu.matmul %arg8, %1, %cst_27 {dimension_numbers = #tpu.dot_dimension_numbers<[1], [0], [0], [1], [0, 0, 1, 1], [], []>} : vector<8x128xf32>, vector<128x512xf32>, vector<8x512xf32> -> vector<8x512xf32>
      %38 = arith.addf %36, %37 : vector<8x512xf32>
      %39 = vector.extract_strided_slice %38 {offsets = [0, 0], sizes = [8, 128], strides = [1, 1]} : vector<8x512xf32> to vector<8x128xf32>
      %40 = arith.negf %39 : vector<8x128xf32>
      %41 = math.exp %40 : vector<8x128xf32>
      %cst_28 = arith.constant 1.000000e+00 : f32
      %42 = vector.broadcast %cst_28 : f32 to vector<8x128xf32>
      %43 = arith.addf %42, %41 : vector<8x128xf32>
      %44 = arith.divf %42, %43 : vector<8x128xf32>
      %45 = vector.extract_strided_slice %38 {offsets = [0, 128], sizes = [8, 128], strides = [1, 1]} : vector<8x512xf32> to vector<8x128xf32>
      %46 = arith.negf %45 : vector<8x128xf32>
      %47 = math.exp %46 : vector<8x128xf32>
      %cst_29 = arith.constant 1.000000e+00 : f32
      %48 = vector.broadcast %cst_29 : f32 to vector<8x128xf32>
      %49 = arith.addf %48, %47 : vector<8x128xf32>
      %50 = arith.divf %48, %49 : vector<8x128xf32>
      %51 = vector.extract_strided_slice %38 {offsets = [0, 256], sizes = [8, 128], strides = [1, 1]} : vector<8x512xf32> to vector<8x128xf32>
      %52 = math.tanh %51 : vector<8x128xf32>
      %53 = vector.extract_strided_slice %38 {offsets = [0, 384], sizes = [8, 128], strides = [1, 1]} : vector<8x512xf32> to vector<8x128xf32>
      %54 = arith.negf %53 : vector<8x128xf32>
      %55 = math.exp %54 : vector<8x128xf32>
      %cst_30 = arith.constant 1.000000e+00 : f32
      %56 = vector.broadcast %cst_30 : f32 to vector<8x128xf32>
      %57 = arith.addf %56, %55 : vector<8x128xf32>
      %58 = arith.divf %56, %57 : vector<8x128xf32>
      %59 = arith.mulf %50, %arg9 : vector<8x128xf32>
      %60 = arith.mulf %44, %52 : vector<8x128xf32>
      %61 = arith.addf %59, %60 : vector<8x128xf32>
      %62 = math.tanh %61 : vector<8x128xf32>
      %63 = arith.mulf %58, %62 : vector<8x128xf32>
      %64 = arith.addi %6, %arg7 : i32
      %65 = arith.index_cast %64 : i32 to index
      %c0_31 = arith.constant 0 : index
      %c0_32 = arith.constant 0 : index
      %66 = vector.load %arg5[%65, %c0_31, %c0_32] : memref<8x8x128xf32, #tpu.memory_space<vmem>>, vector<1x8x128xf32>
      %67 = vector.shape_cast %66 : vector<1x8x128xf32> to vector<8x128xf32>
      %68 = vector.shape_cast %63 : vector<8x128xf32> to vector<1x8x128xf32>
      tpu.vector_store %arg5[%65, %c0_31, %c0_32], %68 {strides = array<i32>} : memref<8x8x128xf32, #tpu.memory_space<vmem>>, vector<1x8x128xf32>,
      %cst_33 = arith.constant dense<0.000000e+00> : vector<8xf32>
      %69 = vector.multi_reduction <add>, %63, %cst_33 [1] : vector<8x128xf32> to vector<8xf32>
      %70 = vector.shape_cast %69 : vector<8xf32> to vector<8x1xf32>
      %71 = arith.addf %arg10, %70 : vector<8x1xf32>
      %72 = arith.mulf %63, %63 : vector<8x128xf32>
      %cst_34 = arith.constant dense<0.000000e+00> : vector<8xf32>
      %73 = vector.multi_reduction <add>, %72, %cst_34 [1] : vector<8x128xf32> to vector<8xf32>
      %74 = vector.shape_cast %73 : vector<8xf32> to vector<8x1xf32>
      %75 = arith.addf %arg11, %74 : vector<8x1xf32>
      scf.yield %63, %61, %71, %75 : vector<8x128xf32>, vector<8x128xf32>, vector<8x1xf32>, vector<8x1xf32>
    }
    %c8_i32_14 = arith.constant 8 : i32
    %c1_i32_15 = arith.constant 1 : i32
    %cst_16 = arith.constant 3.906250e-03 : f32
    %17 = vector.broadcast %cst_16 : f32 to vector<8x1xf32>
    %18 = arith.mulf %16#2, %17 : vector<8x1xf32>
    %cst_17 = arith.constant 3.906250e-03 : f32
    %19 = vector.broadcast %cst_17 : f32 to vector<8x1xf32>
    %20 = arith.mulf %16#3, %19 : vector<8x1xf32>
    %21 = arith.mulf %18, %18 : vector<8x1xf32>
    %22 = arith.subf %20, %21 : vector<8x1xf32>
    %cst_18 = arith.constant 9.99999974E-6 : f32
    %23 = vector.broadcast %cst_18 : f32 to vector<8x1xf32>
    %24 = arith.addf %22, %23 : vector<8x1xf32>
    %25 = math.rsqrt %24 : vector<8x1xf32>
    %c0_19 = arith.constant 0 : index
    %c0_20 = arith.constant 0 : index
    %c0_21 = arith.constant 0 : index
    %26 = vector.load %arg5[%c0_19, %c0_20, %c0_21] : memref<8x8x128xf32, #tpu.memory_space<vmem>>, vector<8x8x128xf32>
    %27 = vector.shape_cast %18 : vector<8x1xf32> to vector<1x8x1xf32>
    %28 = vector.broadcast %27 : vector<1x8x1xf32> to vector<8x8x128xf32>
    %29 = arith.subf %26, %28 : vector<8x8x128xf32>
    %30 = vector.shape_cast %25 : vector<8x1xf32> to vector<1x8x1xf32>
    %31 = vector.broadcast %30 : vector<1x8x1xf32> to vector<8x8x128xf32>
    %32 = arith.mulf %29, %31 : vector<8x8x128xf32>
    %c0_22 = arith.constant 0 : index
    %c0_23 = arith.constant 0 : index
    %c0_24 = arith.constant 0 : index
    %33 = vector.load %arg5[%c0_22, %c0_23, %c0_24] : memref<8x8x128xf32, #tpu.memory_space<vmem>>, vector<8x8x128xf32>
    tpu.vector_store %arg5[%c0_22, %c0_23, %c0_24], %32 {strides = array<i32>} : memref<8x8x128xf32, #tpu.memory_space<vmem>>, vector<8x8x128xf32>,
    return
  }
  func.func @transform_0(%arg0: i32) -> (i32, i32, i32) {
    %c0_i32 = arith.constant 0 : i32
    %c0_i32_0 = arith.constant 0 : i32
    %c0_i32_1 = arith.constant 0 : i32
    return %c0_i32, %arg0, %c0_i32_0 : i32, i32, i32
  }
  func.func @transform_1(%arg0: i32) -> (i32, i32) {
    %c0_i32 = arith.constant 0 : i32
    %c0_i32_0 = arith.constant 0 : i32
    %c0_i32_1 = arith.constant 0 : i32
    return %c0_i32, %c0_i32_0 : i32, i32
  }
  func.func @transform_2(%arg0: i32) -> (i32, i32) {
    %c0_i32 = arith.constant 0 : i32
    %c0_i32_0 = arith.constant 0 : i32
    %c0_i32_1 = arith.constant 0 : i32
    return %c0_i32, %c0_i32_0 : i32, i32
  }
  func.func @transform_3(%arg0: i32) -> (i32, i32) {
    %c0_i32 = arith.constant 0 : i32
    %c0_i32_0 = arith.constant 0 : i32
    %c0_i32_1 = arith.constant 0 : i32
    return %c0_i32, %c0_i32_0 : i32, i32
  }
  func.func @transform_4(%arg0: i32) -> (i32, i32, i32) {
    %c0_i32 = arith.constant 0 : i32
    %c0_i32_0 = arith.constant 0 : i32
    %c0_i32_1 = arith.constant 0 : i32
    return %c0_i32, %arg0, %c0_i32_0 : i32, i32, i32
  }
}

module attributes {stable_mosaic.version = 11 : i64} {
  func.func @output_proj_kernel(%arg0: i32, %arg1: i32, %arg2: memref<64x128xf32, #tpu.memory_space<vmem>>, %arg3: memref<128x128xf32, #tpu.memory_space<vmem>>, %arg4: memref<1x128xf32, #tpu.memory_space<vmem>>, %arg5: memref<64x128xf32, #tpu.memory_space<vmem>>) attributes {dimension_semantics = [#tpu.dimension_semantics<parallel>, #tpu.dimension_semantics<parallel>], iteration_bounds = array<i64: 1, 1>, scalar_prefetch = 0 : i64, scratch_operands = 0 : i64, tpu.core_type = #tpu.core_type<tc>, window_params = [{transform_indices = @transform_0, window_bounds = array<i64: 64, 128>}, {transform_indices = @transform_1, window_bounds = array<i64: 128, 128>}, {transform_indices = @transform_2, window_bounds = array<i64: 1, 128>}, {transform_indices = @transform_3, window_bounds = array<i64: 64, 128>}]} {
    %c0 = arith.constant 0 : index
    %c0_0 = arith.constant 0 : index
    %0 = vector.load %arg2[%c0, %c0_0] : memref<64x128xf32, #tpu.memory_space<vmem>>, vector<64x128xf32>
    %c0_1 = arith.constant 0 : index
    %c0_2 = arith.constant 0 : index
    %1 = vector.load %arg3[%c0_1, %c0_2] : memref<128x128xf32, #tpu.memory_space<vmem>>, vector<128x128xf32>
    %cst = arith.constant dense<0.000000e+00> : vector<64x128xf32>
    %2 = tpu.matmul %0, %1, %cst {dimension_numbers = #tpu.dot_dimension_numbers<[1], [0], [0], [1], [0, 0, 1, 1], [], []>} : vector<64x128xf32>, vector<128x128xf32>, vector<64x128xf32> -> vector<64x128xf32>
    %c0_3 = arith.constant 0 : index
    %c0_4 = arith.constant 0 : index
    %3 = vector.load %arg4[%c0_3, %c0_4] : memref<1x128xf32, #tpu.memory_space<vmem>>, vector<1x128xf32>
    %4 = vector.broadcast %3 : vector<1x128xf32> to vector<64x128xf32>
    %5 = arith.addf %2, %4 : vector<64x128xf32>
    %c0_5 = arith.constant 0 : index
    %c0_6 = arith.constant 0 : index
    %6 = vector.load %arg5[%c0_5, %c0_6] : memref<64x128xf32, #tpu.memory_space<vmem>>, vector<64x128xf32>
    tpu.vector_store %arg5[%c0_5, %c0_6], %5 {strides = array<i32>} : memref<64x128xf32, #tpu.memory_space<vmem>>, vector<64x128xf32>,
    return
  }
  func.func @transform_0(%arg0: i32, %arg1: i32) -> (i32, i32) {
    %c0_i32 = arith.constant 0 : i32
    %c0_i32_0 = arith.constant 0 : i32
    return %arg0, %c0_i32 : i32, i32
  }
  func.func @transform_1(%arg0: i32, %arg1: i32) -> (i32, i32) {
    %c0_i32 = arith.constant 0 : i32
    %c0_i32_0 = arith.constant 0 : i32
    return %c0_i32, %arg1 : i32, i32
  }
  func.func @transform_2(%arg0: i32, %arg1: i32) -> (i32, i32) {
    %c0_i32 = arith.constant 0 : i32
    %c0_i32_0 = arith.constant 0 : i32
    return %c0_i32, %arg1 : i32, i32
  }
  func.func @transform_3(%arg0: i32, %arg1: i32) -> (i32, i32) {
    %c0_i32 = arith.constant 0 : i32
    return %arg0, %arg1 : i32, i32
  }
}

</mosaic_0001>

<bundles_post_ra>
// kernel: language_model_forward.3
= control target key start
LH: loop header
LB: loop body
LE: loop exit
PB: predicated region body
PF: predicated region fallthrough
CT: control target
= control target key end

     0   :  { %s263_s1 = inlined_call_operand.vmem [shape: f32[128,128], index: 1, kind: input, shape index: {}]   ;;  %s264_s2 = inlined_call_operand.vmem [shape: f32[1,128], index: 2, kind: input, shape index: {}]   ;;  %s265_s0 = inlined_call_operand.vmem [shape: f32[64,128], index: 0, kind: input, shape index: {}]   ;;  %s266_s3 = inlined_call_operand.vmem [shape: f32[64,128], index: 3, kind: output, shape index: {}]  }
   0x1   :  { %v37_v0 = vld [vmem:[%s263_s1 + $0x78] sm:$0xff]  ;;  %v36_v1 = vld [vmem:[%s263_s1 + $0x70] sm:$0xff]  ;;  %v35_v2 = vld [vmem:[%s263_s1 + $0x68] sm:$0xff] }
   0x2   :  { %96 = vmatpush.msra.mxu2 %v37_v0  ;;  %97 = vmatpush.msra.mxu3 %v37_v0  ;;  %v34_v3 = vld [vmem:[%s263_s1 + $0x60] sm:$0xff]  ;;  %v33_v4 = vld [vmem:[%s263_s1 + $0x58] sm:$0xff]  ;;  %v32_v5 = vld [vmem:[%s263_s1 + $0x50] sm:$0xff] }
   0x3   :  { %42 = vmatpush.msra.mxu0 %v37_v0  ;;  %95 = vmatpush.msra.mxu1 %v37_v0  ;;  %v31_v6 = vld [vmem:[%s263_s1 + $0x48] sm:$0xff]  ;;  %v30_v7 = vld [vmem:[%s263_s1 + $0x40] sm:$0xff]  ;;  %v29_v8 = vld [vmem:[%s263_s1 + $0x38] sm:$0xff] }
   0x4   :  { %99 = vmatpush.msra.mxu2 %v36_v1  ;;  %100 = vmatpush.msra.mxu3 %v36_v1  ;;  %v28_v9 = vld [vmem:[%s263_s1 + $0x30] sm:$0xff]  ;;  %v27_v10 = vld [vmem:[%s263_s1 + $0x28] sm:$0xff]  ;;  %v26_v11 = vld [vmem:[%s263_s1 + $0x20] sm:$0xff] }
   0x5   :  { %43 = vmatpush.msra.mxu0 %v36_v1  ;;  %98 = vmatpush.msra.mxu1 %v36_v1  ;;  %v25_v12 = vld [vmem:[%s263_s1 + $0x18] sm:$0xff]  ;;  %v24_v13 = vld [vmem:[%s263_s1 + $0x10] sm:$0xff]  ;;  %v23_v14 = vld [vmem:[%s263_s1 + $0x8] sm:$0xff] }
   0x6   :  { %102 = vmatpush.msra.mxu2 %v35_v2  ;;  %103 = vmatpush.msra.mxu3 %v35_v2  ;;  %v22_v15 = vld [vmem:[%s263_s1] sm:$0xff]  ;;  %v20_v17 = vld [vmem:[%s265_s0 + $0x30] sm:$0xff]  ;;  %v19_v20 = vld [vmem:[%s265_s0 + $0x28] sm:$0xff] }
   0x7   :  { %44 = vmatpush.msra.mxu0 %v35_v2  ;;  %101 = vmatpush.msra.mxu1 %v35_v2  ;;  %v18_v16 = vld [vmem:[%s265_s0 + $0x20] sm:$0xff]  ;;  %v16_v19 = vld [vmem:[%s265_s0 + $0x10] sm:$0xff]  ;;  %v21_v21 = vld [vmem:[%s265_s0 + $0x38] sm:$0xff] }
   0x8   :  { %105 = vmatpush.msra.mxu2 %v34_v3  ;;  %106 = vmatpush.msra.mxu3 %v34_v3  ;;  %v14_v18 = vld [vmem:[%s265_s0] sm:$0xff]  ;;  %v15_v22 = vld [vmem:[%s265_s0 + $0x8] sm:$0xff]  ;;  %v17_v23 = vld [vmem:[%s265_s0 + $0x18] sm:$0xff] }
   0x9   :  { %45 = vmatpush.msra.mxu0 %v34_v3  ;;  %104 = vmatpush.msra.mxu1 %v34_v3  ;;  %v143_v24 = vld [vmem:[%s264_s2] ss:$0 sm:$0xff] }
   0xa   :  { %108 = vmatpush.msra.mxu2 %v33_v4  ;;  %109 = vmatpush.msra.mxu3 %v33_v4 }
   0xb   :  { %46 = vmatpush.msra.mxu0 %v33_v4  ;;  %107 = vmatpush.msra.mxu1 %v33_v4 }
   0xc   :  { %111 = vmatpush.msra.mxu2 %v32_v5  ;;  %112 = vmatpush.msra.mxu3 %v32_v5 }
   0xd   :  { %47 = vmatpush.msra.mxu0 %v32_v5  ;;  %110 = vmatpush.msra.mxu1 %v32_v5 }
   0xe   :  { %114 = vmatpush.msra.mxu2 %v31_v6  ;;  %115 = vmatpush.msra.mxu3 %v31_v6 }
   0xf   :  { %48 = vmatpush.msra.mxu0 %v31_v6  ;;  %113 = vmatpush.msra.mxu1 %v31_v6 }
  0x10   :  { %117 = vmatpush.msra.mxu2 %v30_v7  ;;  %118 = vmatpush.msra.mxu3 %v30_v7 }
  0x11   :  { %49 = vmatpush.msra.mxu0 %v30_v7  ;;  %116 = vmatpush.msra.mxu1 %v30_v7 }
  0x12   :  { %120 = vmatpush.msra.mxu2 %v29_v8  ;;  %121 = vmatpush.msra.mxu3 %v29_v8 }
  0x13   :  { %50 = vmatpush.msra.mxu0 %v29_v8  ;;  %119 = vmatpush.msra.mxu1 %v29_v8 }
  0x14   :  { %123 = vmatpush.msra.mxu2 %v28_v9  ;;  %124 = vmatpush.msra.mxu3 %v28_v9 }
  0x15   :  { %51 = vmatpush.msra.mxu0 %v28_v9  ;;  %122 = vmatpush.msra.mxu1 %v28_v9 }
  0x16   :  { %126 = vmatpush.msra.mxu2 %v27_v10  ;;  %127 = vmatpush.msra.mxu3 %v27_v10 }
  0x17   :  { %52 = vmatpush.msra.mxu0 %v27_v10  ;;  %125 = vmatpush.msra.mxu1 %v27_v10 }
  0x18   :  { %129 = vmatpush.msra.mxu2 %v26_v11  ;;  %130 = vmatpush.msra.mxu3 %v26_v11 }
  0x19   :  { %53 = vmatpush.msra.mxu0 %v26_v11  ;;  %128 = vmatpush.msra.mxu1 %v26_v11 }
  0x1a   :  { %132 = vmatpush.msra.mxu2 %v25_v12  ;;  %133 = vmatpush.msra.mxu3 %v25_v12 }
  0x1b   :  { %54 = vmatpush.msra.mxu0 %v25_v12  ;;  %131 = vmatpush.msra.mxu1 %v25_v12 }
  0x1c   :  { %135 = vmatpush.msra.mxu2 %v24_v13  ;;  %136 = vmatpush.msra.mxu3 %v24_v13 }
  0x1d   :  { %55 = vmatpush.msra.mxu0 %v24_v13  ;;  %134 = vmatpush.msra.mxu1 %v24_v13 }
  0x1e   :  { %138 = vmatpush.msra.mxu2 %v23_v14  ;;  %139 = vmatpush.msra.mxu3 %v23_v14 }
  0x1f   :  { %56 = vmatpush.msra.mxu0 %v23_v14  ;;  %137 = vmatpush.msra.mxu1 %v23_v14 }
  0x20   :  { %141 = vmatpush.msra.mxu2 %v22_v15  ;;  %142 = vmatpush.msra.mxu3 %v22_v15 }
  0x21   :  { %70 = vmatmul.f32.vlgmr.msra.gmra.mxu2 %v18_v16  ;;  %76 = vmatmul.f32.vlgmr.msra.gmra.mxu3 %v20_v17 }
  0x22   :  { %57 = vmatpush.msra.mxu0 %v22_v15  ;;  %140 = vmatpush.msra.mxu1 %v22_v15 }
  0x23   :  { %58 = vmatmul.f32.vlgmr.msra.gmra.mxu0 %v14_v18  ;;  %64 = vmatmul.f32.vlgmr.msra.gmra.mxu1 %v16_v19 }
  0x29   :  { %73 = vmatmul.f32.gmra.mxu2 %v19_v20  ;;  %79 = vmatmul.f32.gmra.mxu3 %v21_v21 }
  0x2b   :  { %61 = vmatmul.f32.gmra.mxu0 %v15_v22  ;;  %67 = vmatmul.f32.gmra.mxu1 %v17_v23 }
  0xa0   :  { %v59_v25 = vpop.f32.mrf.mxu0  ;;  %v65_v26 = vpop.f32.mrf.mxu1 }
  0xa1   :  { %v60_v27 = vadd.f32 %v143_v24, %v59_v25  ;;  %v66_v28 = vadd.f32 %v143_v24, %v65_v26 }
  0xa3   :  { %83 = vst [vmem:[%s266_s3] sm:$0xff] %v60_v27 }
  0xa4   :  { %85 = vst [vmem:[%s266_s3 + $0x10] sm:$0xff] %v66_v28  ;;  %v71_v29 = vpop.f32.mrf.mxu2  ;;  %v77_v30 = vpop.f32.mrf.mxu3 }
  0xa5   :  { %v72_v31 = vadd.f32 %v143_v24, %v71_v29  ;;  %v78_v32 = vadd.f32 %v143_v24, %v77_v30 }
  0xa7   :  { %87 = vst [vmem:[%s266_s3 + $0x20] sm:$0xff] %v72_v31 }
  0xa8   :  { %89 = vst [vmem:[%s266_s3 + $0x30] sm:$0xff] %v78_v32  ;;  %v62_v33 = vpop.f32.mrf.mxu0  ;;  %v68_v34 = vpop.f32.mrf.mxu1 }
  0xa9   :  { %v63_v35 = vadd.f32 %v143_v24, %v62_v33  ;;  %v69_v36 = vadd.f32 %v143_v24, %v68_v34 }
  0xab   :  { %84 = vst [vmem:[%s266_s3 + $0x8] sm:$0xff] %v63_v35 }
  0xac   :  { %86 = vst [vmem:[%s266_s3 + $0x18] sm:$0xff] %v69_v36  ;;  %v74_v37 = vpop.f32.mrf.mxu2  ;;  %v80_v38 = vpop.f32.mrf.mxu3 }
  0xad   :  { %v75_v39 = vadd.f32 %v143_v24, %v74_v37  ;;  %v81_v40 = vadd.f32 %v143_v24, %v80_v38 }
  0xaf   :  { %88 = vst [vmem:[%s266_s3 + $0x28] sm:$0xff] %v75_v39 }
  0xb0   :  { %90 = vst [vmem:[%s266_s3 + $0x38] sm:$0xff] %v81_v40 }

// kernel: language_model_forward.2
= control target key start
LH: loop header
LB: loop body
LE: loop exit
PB: predicated region body
PF: predicated region fallthrough
CT: control target
= control target key end

     0   :  { %s1477_s1 = inlined_call_operand.vmem [shape: f32[128,512], index: 1, kind: input, shape index: {}]   ;;  %s1478_s2 = inlined_call_operand.vmem [shape: f32[128,512], index: 2, kind: input, shape index: {}]   ;;  %s1479_s4 = inlined_call_operand.vmem [shape: f32[8,8,128], index: 4, kind: output, shape index: {}]   ;;  %s1480_s0 = inlined_call_operand.vmem [shape: f32[8,8,128], index: 0, kind: input, shape index: {}]   ;;  %s1481_s3 = inlined_call_operand.vmem [shape: f32[1,512], index: 3, kind: input, shape index: {}]  }
   0x1   :  { %v79_v0 = vld [vmem:[%s1477_s1 + $0x1f0] sm:$0xff]  ;;  %v80_v1 = vld [vmem:[%s1477_s1 + $0x1f8] sm:$0xff]  ;;  %v77_v6 = vld [vmem:[%s1477_s1 + $0x1e0] sm:$0xff] }
   0x2   :  { %v75_v2 = vld [vmem:[%s1477_s1 + $0x1d0] sm:$0xff]  ;;  %247 = vmatpush.msra.mxu2 %v79_v0  ;;  %288 = vmatpush.msra.mxu3 %v80_v1  ;;  %v76_v3 = vld [vmem:[%s1477_s1 + $0x1d8] sm:$0xff]  ;;  %v762_v7 = vld [vmem:[%s1478_s2] sm:$0xff] }
   0x3   :  { %v71_v4 = vld [vmem:[%s1477_s1 + $0x1b0] sm:$0xff]  ;;  %v72_v5 = vld [vmem:[%s1477_s1 + $0x1b8] sm:$0xff]  ;;  %1482 = vst [vmem:[#allocation3_spill] sm:$0xff] %v762_v7  ;;  %v767_v8 = vld [vmem:[%s1478_s2 + $0x8] sm:$0xff]  ;;  %165 = vmatpush.msra.mxu0 %v77_v6 }
   0x4   :  { %1483 = vst [vmem:[#allocation4_spill] sm:$0xff] %v767_v8  ;;  %248 = vmatpush.msra.mxu2 %v75_v2  ;;  %289 = vmatpush.msra.mxu3 %v76_v3  ;;  %v772_v9 = vld [vmem:[%s1478_s2 + $0x10] sm:$0xff]  ;;  %v777_v10 = vld [vmem:[%s1478_s2 + $0x18] sm:$0xff]  ;;  %v782_v11 = vld [vmem:[%s1478_s2 + $0x20] sm:$0xff] }
   0x5   :  { %1484 = vst [vmem:[#allocation5_spill] sm:$0xff] %v772_v9  ;;  %v787_v12 = vld [vmem:[%s1478_s2 + $0x28] sm:$0xff]  ;;  %v792_v13 = vld [vmem:[%s1478_s2 + $0x30] sm:$0xff]  ;;  %v797_v14 = vld [vmem:[%s1478_s2 + $0x38] sm:$0xff] }
   0x6   :  { %1485 = vst [vmem:[#allocation6_spill] sm:$0xff] %v777_v10  ;;  %249 = vmatpush.msra.mxu2 %v71_v4  ;;  %290 = vmatpush.msra.mxu3 %v72_v5  ;;  %v802_v15 = vld [vmem:[%s1478_s2 + $0x40] sm:$0xff]  ;;  %v807_v16 = vld [vmem:[%s1478_s2 + $0x48] sm:$0xff]  ;;  %v812_v17 = vld [vmem:[%s1478_s2 + $0x50] sm:$0xff] }
   0x7   :  { %1486 = vst [vmem:[#allocation7_spill] sm:$0xff] %v782_v11  ;;  %v817_v18 = vld [vmem:[%s1478_s2 + $0x58] sm:$0xff]  ;;  %v822_v19 = vld [vmem:[%s1478_s2 + $0x60] sm:$0xff]  ;;  %v827_v20 = vld [vmem:[%s1478_s2 + $0x68] sm:$0xff] }
   0x8   :  { %1487 = vst [vmem:[#allocation8_spill] sm:$0xff] %v787_v12  ;;  %v832_v21 = vld [vmem:[%s1478_s2 + $0x70] sm:$0xff]  ;;  %v837_v22 = vld [vmem:[%s1478_s2 + $0x78] sm:$0xff]  ;;  %v842_v23 = vld [vmem:[%s1478_s2 + $0x80] sm:$0xff] }
   0x9   :  { %1488 = vst [vmem:[#allocation9_spill] sm:$0xff] %v792_v13  ;;  %v847_v24 = vld [vmem:[%s1478_s2 + $0x88] sm:$0xff]  ;;  %v852_v25 = vld [vmem:[%s1478_s2 + $0x90] sm:$0xff]  ;;  %v857_v26 = vld [vmem:[%s1478_s2 + $0x98] sm:$0xff] }
   0xa   :  { %1489 = vst [vmem:[#allocation10_spill] sm:$0xff] %v797_v14  ;;  %v862_v27 = vld [vmem:[%s1478_s2 + $0xa0] sm:$0xff]  ;;  %v867_v28 = vld [vmem:[%s1478_s2 + $0xa8] sm:$0xff]  ;;  %v872_v29 = vld [vmem:[%s1478_s2 + $0xb0] sm:$0xff] }
   0xb   :  { %1490 = vst [vmem:[#allocation11_spill] sm:$0xff] %v802_v15  ;;  %v877_v30 = vld [vmem:[%s1478_s2 + $0xb8] sm:$0xff]  ;;  %v882_v31 = vld [vmem:[%s1478_s2 + $0xc0] sm:$0xff]  ;;  %v887_v32 = vld [vmem:[%s1478_s2 + $0xc8] sm:$0xff] }
   0xc   :  { %1491 = vst [vmem:[#allocation12_spill] sm:$0xff] %v807_v16  ;;  %v892_v33 = vld [vmem:[%s1478_s2 + $0xd0] sm:$0xff]  ;;  %v897_v34 = vld [vmem:[%s1478_s2 + $0xd8] sm:$0xff]  ;;  %v902_v35 = vld [vmem:[%s1478_s2 + $0xe0] sm:$0xff] }
   0xd   :  { %1492 = vst [vmem:[#allocation13_spill] sm:$0xff] %v812_v17  ;;  %v907_v36 = vld [vmem:[%s1478_s2 + $0xe8] sm:$0xff]  ;;  %v912_v37 = vld [vmem:[%s1478_s2 + $0xf0] sm:$0xff]  ;;  %v917_v38 = vld [vmem:[%s1478_s2 + $0xf8] sm:$0xff] }
   0xe   :  { %1493 = vst [vmem:[#allocation14_spill] sm:$0xff] %v817_v18  ;;  %v922_v39 = vld [vmem:[%s1478_s2 + $0x100] sm:$0xff]  ;;  %v927_v40 = vld [vmem:[%s1478_s2 + $0x108] sm:$0xff]  ;;  %v932_v41 = vld [vmem:[%s1478_s2 + $0x110] sm:$0xff] }
   0xf   :  { %1494 = vst [vmem:[#allocation15_spill] sm:$0xff] %v822_v19  ;;  %v937_v42 = vld [vmem:[%s1478_s2 + $0x118] sm:$0xff]  ;;  %v942_v43 = vld [vmem:[%s1478_s2 + $0x120] sm:$0xff]  ;;  %v947_v44 = vld [vmem:[%s1478_s2 + $0x128] sm:$0xff] }
  0x10   :  { %1495 = vst [vmem:[#allocation16_spill] sm:$0xff] %v827_v20  ;;  %v952_v45 = vld [vmem:[%s1478_s2 + $0x130] sm:$0xff]  ;;  %v957_v46 = vld [vmem:[%s1478_s2 + $0x138] sm:$0xff]  ;;  %v962_v47 = vld [vmem:[%s1478_s2 + $0x140] sm:$0xff] }
  0x11   :  { %1496 = vst [vmem:[#allocation17_spill] sm:$0xff] %v832_v21  ;;  %v967_v48 = vld [vmem:[%s1478_s2 + $0x148] sm:$0xff]  ;;  %v972_v49 = vld [vmem:[%s1478_s2 + $0x150] sm:$0xff]  ;;  %v977_v50 = vld [vmem:[%s1478_s2 + $0x158] sm:$0xff] }
  0x12   :  { %1497 = vst [vmem:[#allocation18_spill] sm:$0xff] %v837_v22  ;;  %v982_v51 = vld [vmem:[%s1478_s2 + $0x160] sm:$0xff]  ;;  %v987_v52 = vld [vmem:[%s1478_s2 + $0x168] sm:$0xff]  ;;  %v992_v53 = vld [vmem:[%s1478_s2 + $0x170] sm:$0xff] }
  0x13   :  { %1498 = vst [vmem:[#allocation19_spill] sm:$0xff] %v842_v23  ;;  %v997_v54 = vld [vmem:[%s1478_s2 + $0x178] sm:$0xff]  ;;  %v1002_v55 = vld [vmem:[%s1478_s2 + $0x180] sm:$0xff]  ;;  %v1007_v56 = vld [vmem:[%s1478_s2 + $0x188] sm:$0xff] }
  0x14   :  { %1499 = vst [vmem:[#allocation20_spill] sm:$0xff] %v847_v24  ;;  %v1012_v57 = vld [vmem:[%s1478_s2 + $0x190] sm:$0xff]  ;;  %v1017_v58 = vld [vmem:[%s1478_s2 + $0x198] sm:$0xff]  ;;  %v1022_v59 = vld [vmem:[%s1478_s2 + $0x1a0] sm:$0xff] }
  0x15   :  { %1500 = vst [vmem:[#allocation21_spill] sm:$0xff] %v852_v25  ;;  %v1027_v60 = vld [vmem:[%s1478_s2 + $0x1a8] sm:$0xff]  ;;  %v1032_v61 = vld [vmem:[%s1478_s2 + $0x1b0] sm:$0xff]  ;;  %v1037_v62 = vld [vmem:[%s1478_s2 + $0x1b8] sm:$0xff] }
  0x16   :  { %1501 = vst [vmem:[#allocation22_spill] sm:$0xff] %v857_v26  ;;  %v1042_v63 = vld [vmem:[%s1478_s2 + $0x1c0] sm:$0xff]  ;;  %v1047_v0 = vld [vmem:[%s1478_s2 + $0x1c8] sm:$0xff]  ;;  %v1052_v1 = vld [vmem:[%s1478_s2 + $0x1d0] sm:$0xff] }
  0x17   :  { %1502 = vst [vmem:[#allocation23_spill] sm:$0xff] %v1047_v0  ;;  %v1057_v2 = vld [vmem:[%s1478_s2 + $0x1d8] sm:$0xff]  ;;  %v1062_v3 = vld [vmem:[%s1478_s2 + $0x1e0] sm:$0xff]  ;;  %v1067_v4 = vld [vmem:[%s1478_s2 + $0x1e8] sm:$0xff] }
  0x18   :  { %1503 = vst [vmem:[#allocation24_spill] sm:$0xff] %v1052_v1  ;;  %v1072_v5 = vld [vmem:[%s1478_s2 + $0x1f0] sm:$0xff]  ;;  %v1077_v6 = vld [vmem:[%s1478_s2 + $0x1f8] sm:$0xff]  ;;  %v78_v9 = vld [vmem:[%s1477_s1 + $0x1e8] sm:$0xff] }
  0x19   :  { %1504 = vst [vmem:[#allocation25_spill] sm:$0xff] %v1057_v2  ;;  %206 = vmatpush.msra.mxu1 %v78_v9  ;;  %v67_v10 = vld [vmem:[%s1477_s1 + $0x190] sm:$0xff]  ;;  %v68_v8 = vld [vmem:[%s1477_s1 + $0x198] sm:$0xff]  ;;  %v73_v7 = vld [vmem:[%s1477_s1 + $0x1c0] sm:$0xff] }
  0x1a   :  { %1505 = vst [vmem:[#allocation26_spill] sm:$0xff] %v1062_v3  ;;  %250 = vmatpush.msra.mxu2 %v67_v10  ;;  %291 = vmatpush.msra.mxu3 %v68_v8  ;;  %v74_v13 = vld [vmem:[%s1477_s1 + $0x1c8] sm:$0xff]  ;;  %v63_v9 = vld [vmem:[%s1477_s1 + $0x170] sm:$0xff]  ;;  %v64_v14 = vld [vmem:[%s1477_s1 + $0x178] sm:$0xff] }
  0x1b   :  { %1506 = vst [vmem:[#allocation27_spill] sm:$0xff] %v1067_v4  ;;  %166 = vmatpush.msra.mxu0 %v73_v7  ;;  %207 = vmatpush.msra.mxu1 %v74_v13  ;;  %v69_v12 = vld [vmem:[%s1477_s1 + $0x1a0] sm:$0xff]  ;;  %v70_v8 = vld [vmem:[%s1477_s1 + $0x1a8] sm:$0xff]  ;;  %v59_v10 = vld [vmem:[%s1477_s1 + $0x150] sm:$0xff] }
  0x1c   :  { %1507 = vst [vmem:[#allocation28_spill] sm:$0xff] %v1072_v5  ;;  %251 = vmatpush.msra.mxu2 %v63_v9  ;;  %292 = vmatpush.msra.mxu3 %v64_v14  ;;  %v60_v11 = vld [vmem:[%s1477_s1 + $0x158] sm:$0xff]  ;;  %v65_v7 = vld [vmem:[%s1477_s1 + $0x180] sm:$0xff]  ;;  %v66_v13 = vld [vmem:[%s1477_s1 + $0x188] sm:$0xff] }
  0x1d   :  { %1508 = vst [vmem:[#allocation29_spill] sm:$0xff] %v1077_v6  ;;  %167 = vmatpush.msra.mxu0 %v69_v12  ;;  %208 = vmatpush.msra.mxu1 %v70_v8  ;;  %v55_v17 = vld [vmem:[%s1477_s1 + $0x130] sm:$0xff]  ;;  %v56_v14 = vld [vmem:[%s1477_s1 + $0x138] sm:$0xff]  ;;  %v61_v9 = vld [vmem:[%s1477_s1 + $0x160] sm:$0xff] }
  0x1e   :  { %252 = vmatpush.msra.mxu2 %v59_v10  ;;  %293 = vmatpush.msra.mxu3 %v60_v11  ;;  %v62_v18 = vld [vmem:[%s1477_s1 + $0x168] sm:$0xff]  ;;  %v51_v12 = vld [vmem:[%s1477_s1 + $0x110] sm:$0xff]  ;;  %v52_v8 = vld [vmem:[%s1477_s1 + $0x118] sm:$0xff] }
  0x1f   :  { %168 = vmatpush.msra.mxu0 %v65_v7  ;;  %209 = vmatpush.msra.mxu1 %v66_v13  ;;  %v57_v11 = vld [vmem:[%s1477_s1 + $0x140] sm:$0xff]  ;;  %v58_v10 = vld [vmem:[%s1477_s1 + $0x148] sm:$0xff]  ;;  %v47_v7 = vld [vmem:[%s1477_s1 + $0xf0] sm:$0xff] }
  0x20   :  { %253 = vmatpush.msra.mxu2 %v55_v17  ;;  %294 = vmatpush.msra.mxu3 %v56_v14  ;;  %v48_v13 = vld [vmem:[%s1477_s1 + $0xf8] sm:$0xff]  ;;  %v53_v17 = vld [vmem:[%s1477_s1 + $0x120] sm:$0xff]  ;;  %v54_v14 = vld [vmem:[%s1477_s1 + $0x128] sm:$0xff] }
  0x21   :  { %169 = vmatpush.msra.mxu0 %v61_v9  ;;  %210 = vmatpush.msra.mxu1 %v62_v18  ;;  %v43_v18 = vld [vmem:[%s1477_s1 + $0xd0] sm:$0xff]  ;;  %v44_v9 = vld [vmem:[%s1477_s1 + $0xd8] sm:$0xff] }
  0x22   :  { %254 = vmatpush.msra.mxu2 %v51_v12  ;;  %295 = vmatpush.msra.mxu3 %v52_v8  ;;  %v49_v12 = vld [vmem:[%s1477_s1 + $0x100] sm:$0xff]  ;;  %v50_v8 = vld [vmem:[%s1477_s1 + $0x108] sm:$0xff] }
  0x23   :  { %170 = vmatpush.msra.mxu0 %v57_v11  ;;  %211 = vmatpush.msra.mxu1 %v58_v10  ;;  %v39_v11 = vld [vmem:[%s1477_s1 + $0xb0] sm:$0xff]  ;;  %v40_v10 = vld [vmem:[%s1477_s1 + $0xb8] sm:$0xff] }
  0x24   :  { %255 = vmatpush.msra.mxu2 %v47_v7  ;;  %296 = vmatpush.msra.mxu3 %v48_v13  ;;  %v45_v7 = vld [vmem:[%s1477_s1 + $0xe0] sm:$0xff]  ;;  %v46_v13 = vld [vmem:[%s1477_s1 + $0xe8] sm:$0xff] }
  0x25   :  { %171 = vmatpush.msra.mxu0 %v53_v17  ;;  %212 = vmatpush.msra.mxu1 %v54_v14  ;;  %v35_v17 = vld [vmem:[%s1477_s1 + $0x90] sm:$0xff]  ;;  %v36_v14 = vld [vmem:[%s1477_s1 + $0x98] sm:$0xff] }
  0x26   :  { %256 = vmatpush.msra.mxu2 %v43_v18  ;;  %297 = vmatpush.msra.mxu3 %v44_v9  ;;  %v41_v18 = vld [vmem:[%s1477_s1 + $0xc0] sm:$0xff]  ;;  %v42_v9 = vld [vmem:[%s1477_s1 + $0xc8] sm:$0xff] }
  0x27   :  { %172 = vmatpush.msra.mxu0 %v49_v12  ;;  %213 = vmatpush.msra.mxu1 %v50_v8  ;;  %v31_v12 = vld [vmem:[%s1477_s1 + $0x70] sm:$0xff]  ;;  %v32_v8 = vld [vmem:[%s1477_s1 + $0x78] sm:$0xff] }
  0x28   :  { %257 = vmatpush.msra.mxu2 %v39_v11  ;;  %298 = vmatpush.msra.mxu3 %v40_v10  ;;  %v37_v11 = vld [vmem:[%s1477_s1 + $0xa0] sm:$0xff]  ;;  %v38_v10 = vld [vmem:[%s1477_s1 + $0xa8] sm:$0xff] }
  0x29   :  { %173 = vmatpush.msra.mxu0 %v45_v7  ;;  %214 = vmatpush.msra.mxu1 %v46_v13  ;;  %v27_v7 = vld [vmem:[%s1477_s1 + $0x50] sm:$0xff]  ;;  %v28_v13 = vld [vmem:[%s1477_s1 + $0x58] sm:$0xff] }
  0x2a   :  { %258 = vmatpush.msra.mxu2 %v35_v17  ;;  %299 = vmatpush.msra.mxu3 %v36_v14  ;;  %v33_v17 = vld [vmem:[%s1477_s1 + $0x80] sm:$0xff]  ;;  %v34_v14 = vld [vmem:[%s1477_s1 + $0x88] sm:$0xff] }
  0x2b   :  { %174 = vmatpush.msra.mxu0 %v41_v18  ;;  %215 = vmatpush.msra.mxu1 %v42_v9  ;;  %v23_v18 = vld [vmem:[%s1477_s1 + $0x30] sm:$0xff]  ;;  %v24_v9 = vld [vmem:[%s1477_s1 + $0x38] sm:$0xff] }
  0x2c   :  { %259 = vmatpush.msra.mxu2 %v31_v12  ;;  %300 = vmatpush.msra.mxu3 %v32_v8  ;;  %v29_v12 = vld [vmem:[%s1477_s1 + $0x60] sm:$0xff]  ;;  %v30_v8 = vld [vmem:[%s1477_s1 + $0x68] sm:$0xff] }
  0x2d   :  { %175 = vmatpush.msra.mxu0 %v37_v11  ;;  %216 = vmatpush.msra.mxu1 %v38_v10  ;;  %v19_v11 = vld [vmem:[%s1477_s1 + $0x10] sm:$0xff]  ;;  %v20_v10 = vld [vmem:[%s1477_s1 + $0x18] sm:$0xff] }
  0x2e   :  { %260 = vmatpush.msra.mxu2 %v27_v7  ;;  %301 = vmatpush.msra.mxu3 %v28_v13  ;;  %v148_v7 = vld [vmem:[%s1480_s0] sm:$0xff] }
  0x2f   :  { %176 = vmatpush.msra.mxu0 %v33_v17  ;;  %217 = vmatpush.msra.mxu1 %v34_v14  ;;  %v25_v13 = vld [vmem:[%s1477_s1 + $0x40] sm:$0xff]  ;;  %v26_v17 = vld [vmem:[%s1477_s1 + $0x48] sm:$0xff] }
  0x30   :  { %261 = vmatpush.msra.mxu2 %v23_v18  ;;  %302 = vmatpush.msra.mxu3 %v24_v9  ;;  %v21_v14 = vld [vmem:[%s1477_s1 + $0x20] sm:$0xff]  ;;  %v22_v18 = vld [vmem:[%s1477_s1 + $0x28] sm:$0xff] }
  0x31   :  { %177 = vmatpush.msra.mxu0 %v29_v12  ;;  %218 = vmatpush.msra.mxu1 %v30_v8  ;;  %v17_v9 = vld [vmem:[%s1477_s1] sm:$0xff]  ;;  %v18_v12 = vld [vmem:[%s1477_s1 + $0x8] sm:$0xff] }
  0x32   :  { %262 = vmatpush.msra.mxu2 %v19_v11  ;;  %303 = vmatpush.msra.mxu3 %v20_v10  ;;  %v149_v8 = vld [vmem:[%s1480_s0 + $0x8] sm:$0xff]  ;;  %v150_v11 = vld [vmem:[%s1480_s0 + $0x10] sm:$0xff]  ;;  %v151_v10 = vld [vmem:[%s1480_s0 + $0x18] sm:$0xff] }
  0x33   :  { %263 = vmatmul.f32.vlgmr.msra.gmra.mxu2 %v148_v7  ;;  %304 = vmatmul.f32.vlgmr.msra.gmra.mxu3 %v148_v7 }
  0x34   :  { %178 = vmatpush.msra.mxu0 %v25_v13  ;;  %219 = vmatpush.msra.mxu1 %v26_v17  ;;  %v153_v13 = vld [vmem:[%s1480_s0 + $0x28] sm:$0xff]  ;;  %v154_v17 = vld [vmem:[%s1480_s0 + $0x30] sm:$0xff] }
  0x36   :  { %179 = vmatpush.msra.mxu0 %v21_v14  ;;  %220 = vmatpush.msra.mxu1 %v22_v18  ;;  %v155_v14 = vld [vmem:[%s1480_s0 + $0x38] sm:$0xff]  ;;  %v145_v18 = vld [vmem:[%s1481_s3] sm:$0xf] }
  0x38   :  { %180 = vmatpush.msra.mxu0 %v17_v9  ;;  %221 = vmatpush.msra.mxu1 %v18_v12  ;;  %v1277_v9 = vperm.slane %v145_v18, 0  ;;  %v1279_v12 = vperm.slane %v145_v18, 1 }
  0x39   :  { %181 = vmatmul.f32.vlgmr.msra.gmra.mxu0 %v148_v7  ;;  %222 = vmatmul.f32.vlgmr.msra.gmra.mxu1 %v148_v7  ;;  %v152_v7 = vld [vmem:[%s1480_s0 + $0x20] sm:$0xff]  ;;  %s1325_s0 = smov 0  }
  0x3b   :  { %266 = vmatmul.f32.gmra.mxu2 %v149_v8  ;;  %307 = vmatmul.f32.gmra.mxu3 %v149_v8 }
  0x41   :  { %184 = vmatmul.f32.gmra.mxu0 %v149_v8  ;;  %225 = vmatmul.f32.gmra.mxu1 %v149_v8  ;;  %v1281_v8 = vperm.slane %v145_v18, 2 }
  0x43   :  { %269 = vmatmul.f32.gmra.mxu2 %v150_v11  ;;  %310 = vmatmul.f32.gmra.mxu3 %v150_v11 }
  0x49   :  { %187 = vmatmul.f32.gmra.mxu0 %v150_v11  ;;  %228 = vmatmul.f32.gmra.mxu1 %v150_v11  ;;  %v1283_v11 = vperm.slane %v145_v18, 3 }
  0x4b   :  { %272 = vmatmul.f32.gmra.mxu2 %v151_v10  ;;  %313 = vmatmul.f32.gmra.mxu3 %v151_v10 }
  0x51   :  { %190 = vmatmul.f32.gmra.mxu0 %v151_v10  ;;  %231 = vmatmul.f32.gmra.mxu1 %v151_v10 }
  0x53   :  { %275 = vmatmul.f32.gmra.mxu2 %v152_v7  ;;  %316 = vmatmul.f32.gmra.mxu3 %v152_v7 }
  0x59   :  { %193 = vmatmul.f32.gmra.mxu0 %v152_v7  ;;  %234 = vmatmul.f32.gmra.mxu1 %v152_v7 }
  0x5b   :  { %278 = vmatmul.f32.gmra.mxu2 %v153_v13  ;;  %319 = vmatmul.f32.gmra.mxu3 %v153_v13 }
  0x61   :  { %196 = vmatmul.f32.gmra.mxu0 %v153_v13  ;;  %237 = vmatmul.f32.gmra.mxu1 %v153_v13 }
  0x63   :  { %281 = vmatmul.f32.gmra.mxu2 %v154_v17  ;;  %322 = vmatmul.f32.gmra.mxu3 %v154_v17 }
  0x69   :  { %199 = vmatmul.f32.gmra.mxu0 %v154_v17  ;;  %240 = vmatmul.f32.gmra.mxu1 %v154_v17 }
  0x6b   :  { %284 = vmatmul.f32.gmra.mxu2 %v155_v14  ;;  %325 = vmatmul.f32.gmra.mxu3 %v155_v14 }
  0x71   :  { %202 = vmatmul.f32.gmra.mxu0 %v155_v14  ;;  %243 = vmatmul.f32.gmra.mxu1 %v155_v14 }
  0xb6   :  { %v182_v10 = vpop.f32.mrf.mxu0  ;;  %v223_v7 = vpop.f32.mrf.mxu1 }
  0xb7   :  { %v183_v13 = vadd.f32 %v182_v10, %v1277_v9  ;;  %v224_v17 = vadd.f32 %v223_v7, %v1279_v12  ;;  %v264_v16 = vpop.f32.mrf.mxu2  ;;  %v305_v14 = vpop.f32.mrf.mxu3 }
  0xb8   :  { %v265_v15 = vadd.f32 %v264_v16, %v1281_v8  ;;  %v306_v21 = vadd.f32 %v305_v14, %v1283_v11 }
  0xb9   :  { %329 = vst [vmem:[#allocation2] sm:$0xff] %v183_v13 }
  0xba   :  { %330 = vst [vmem:[#allocation2 + $0x8] sm:$0xff] %v224_v17 }
  0xbb   :  { %331 = vst [vmem:[#allocation2 + $0x10] sm:$0xff] %v265_v15 }
  0xbc   :  { %332 = vst [vmem:[#allocation2 + $0x18] sm:$0xff] %v306_v21 }
  0xbe   :  { %v185_v22 = vpop.f32.mrf.mxu0  ;;  %v226_v20 = vpop.f32.mrf.mxu1 }
  0xbf   :  { %v186_v18 = vadd.f32 %v185_v22, %v1277_v9  ;;  %v227_v19 = vadd.f32 %v226_v20, %v1279_v12  ;;  %v267_v25 = vpop.f32.mrf.mxu2  ;;  %v308_v10 = vpop.f32.mrf.mxu3 }
  0xc0   :  { %v268_v7 = vadd.f32 %v267_v25, %v1281_v8  ;;  %v309_v26 = vadd.f32 %v308_v10, %v1283_v11 }
  0xc1   :  { %333 = vst [vmem:[#allocation2 + $0x20] sm:$0xff] %v186_v18 }
  0xc2   :  { %334 = vst [vmem:[#allocation2 + $0x28] sm:$0xff] %v227_v19 }
  0xc3   :  { %335 = vst [vmem:[#allocation2 + $0x30] sm:$0xff] %v268_v7 }
  0xc4   :  { %336 = vst [vmem:[#allocation2 + $0x38] sm:$0xff] %v309_v26 }
  0xc6   :  { %v188_v16 = vpop.f32.mrf.mxu0  ;;  %v229_v13 = vpop.f32.mrf.mxu1 }
  0xc7   :  { %v189_v15 = vadd.f32 %v188_v16, %v1277_v9  ;;  %v230_v21 = vadd.f32 %v229_v13, %v1279_v12  ;;  %v270_v17 = vpop.f32.mrf.mxu2  ;;  %v311_v22 = vpop.f32.mrf.mxu3 }
  0xc8   :  { %v271_v20 = vadd.f32 %v270_v17, %v1281_v8  ;;  %v312_v14 = vadd.f32 %v311_v22, %v1283_v11 }
  0xc9   :  { %337 = vst [vmem:[#allocation2 + $0x40] sm:$0xff] %v189_v15 }
  0xca   :  { %338 = vst [vmem:[#allocation2 + $0x48] sm:$0xff] %v230_v21 }
  0xcb   :  { %339 = vst [vmem:[#allocation2 + $0x50] sm:$0xff] %v271_v20 }
  0xcc   :  { %340 = vst [vmem:[#allocation2 + $0x58] sm:$0xff] %v312_v14 }
  0xce   :  { %v191_v25 = vpop.f32.mrf.mxu0  ;;  %v232_v19 = vpop.f32.mrf.mxu1 }
  0xcf   :  { %v192_v26 = vadd.f32 %v191_v25, %v1277_v9  ;;  %v233_v18 = vadd.f32 %v232_v19, %v1279_v12  ;;  %v273_v10 = vpop.f32.mrf.mxu2  ;;  %v314_v7 = vpop.f32.mrf.mxu3 }
  0xd0   :  { %v274_v16 = vadd.f32 %v273_v10, %v1281_v8  ;;  %v315_v13 = vadd.f32 %v314_v7, %v1283_v11 }
  0xd1   :  { %341 = vst [vmem:[#allocation2 + $0x60] sm:$0xff] %v192_v26 }
  0xd2   :  { %342 = vst [vmem:[#allocation2 + $0x68] sm:$0xff] %v233_v18 }
  0xd3   :  { %343 = vst [vmem:[#allocation2 + $0x70] sm:$0xff] %v274_v16 }
  0xd4   :  { %344 = vst [vmem:[#allocation2 + $0x78] sm:$0xff] %v315_v13 }
  0xd6   :  { %v194_v15 = vpop.f32.mrf.mxu0  ;;  %v235_v21 = vpop.f32.mrf.mxu1 }
  0xd7   :  { %v195_v17 = vadd.f32 %v194_v15, %v1277_v9  ;;  %v236_v22 = vadd.f32 %v235_v21, %v1279_v12  ;;  %v276_v20 = vpop.f32.mrf.mxu2  ;;  %v317_v14 = vpop.f32.mrf.mxu3 }
  0xd8   :  { %v277_v25 = vadd.f32 %v276_v20, %v1281_v8  ;;  %v318_v19 = vadd.f32 %v317_v14, %v1283_v11 }
  0xd9   :  { %345 = vst [vmem:[#allocation2 + $0x80] sm:$0xff] %v195_v17 }
  0xda   :  { %346 = vst [vmem:[#allocation2 + $0x88] sm:$0xff] %v236_v22 }
  0xdb   :  { %347 = vst [vmem:[#allocation2 + $0x90] sm:$0xff] %v277_v25 }
  0xdc   :  { %348 = vst [vmem:[#allocation2 + $0x98] sm:$0xff] %v318_v19 }
  0xde   :  { %v197_v26 = vpop.f32.mrf.mxu0  ;;  %v238_v18 = vpop.f32.mrf.mxu1 }
  0xdf   :  { %v198_v10 = vadd.f32 %v197_v26, %v1277_v9  ;;  %v239_v7 = vadd.f32 %v238_v18, %v1279_v12  ;;  %v279_v16 = vpop.f32.mrf.mxu2  ;;  %v320_v13 = vpop.f32.mrf.mxu3 }
  0xe0   :  { %v280_v15 = vadd.f32 %v279_v16, %v1281_v8  ;;  %v321_v21 = vadd.f32 %v320_v13, %v1283_v11 }
  0xe1   :  { %349 = vst [vmem:[#allocation2 + $0xa0] sm:$0xff] %v198_v10 }
  0xe2   :  { %350 = vst [vmem:[#allocation2 + $0xa8] sm:$0xff] %v239_v7 }
  0xe3   :  { %351 = vst [vmem:[#allocation2 + $0xb0] sm:$0xff] %v280_v15 }
  0xe4   :  { %352 = vst [vmem:[#allocation2 + $0xb8] sm:$0xff] %v321_v21 }
  0xe6   :  { %v200_v17 = vpop.f32.mrf.mxu0  ;;  %v241_v22 = vpop.f32.mrf.mxu1 }
  0xe7   :  { %v201_v20 = vadd.f32 %v200_v17, %v1277_v9  ;;  %v242_v14 = vadd.f32 %v241_v22, %v1279_v12  ;;  %v282_v25 = vpop.f32.mrf.mxu2  ;;  %v323_v19 = vpop.f32.mrf.mxu3 }
  0xe8   :  { %v283_v26 = vadd.f32 %v282_v25, %v1281_v8  ;;  %v324_v18 = vadd.f32 %v323_v19, %v1283_v11  ;;  %v1321_v25 = vmov 0.0   ;;  %v1323_v19 = vmov 0.0  }
  0xe9   :  { %353 = vst [vmem:[#allocation2 + $0xc0] sm:$0xff] %v201_v20  ;;  %v1317_v20 = vmov 0.0  }
  0xea   :  { %354 = vst [vmem:[#allocation2 + $0xc8] sm:$0xff] %v242_v14  ;;  %v1319_v14 = vmov 0.0  }
  0xeb   :  { %355 = vst [vmem:[#allocation2 + $0xd0] sm:$0xff] %v283_v26 }
  0xec   :  { %356 = vst [vmem:[#allocation2 + $0xd8] sm:$0xff] %v324_v18 }
  0xee   :  { %v203_v10 = vpop.f32.mrf.mxu0  ;;  %v244_v7 = vpop.f32.mrf.mxu1 }
  0xef   :  { %v204_v16 = vadd.f32 %v203_v10, %v1277_v9  ;;  %v245_v13 = vadd.f32 %v244_v7, %v1279_v12  ;;  %v285_v15 = vpop.f32.mrf.mxu2  ;;  %v326_v21 = vpop.f32.mrf.mxu3 }
  0xf0   :  { %v286_v17 = vadd.f32 %v285_v15, %v1281_v8  ;;  %v327_v22 = vadd.f32 %v326_v21, %v1283_v11 }
  0xf1   :  { %357 = vst [vmem:[#allocation2 + $0xe0] sm:$0xff] %v204_v16 }
  0xf2   :  { %358 = vst [vmem:[#allocation2 + $0xe8] sm:$0xff] %v245_v13 }
  0xf3   :  { %359 = vst [vmem:[#allocation2 + $0xf0] sm:$0xff] %v286_v17 }
  0xf4   :  { %360 = vst [vmem:[#allocation2 + $0xf8] sm:$0xff] %v327_v22 }
  0xf5 LB: > { %v1509_v3 = vld [vmem:[#allocation26_spill] sm:$0xff]  ;;  %v1510_v4 = vld [vmem:[#allocation27_spill] sm:$0xff]  ;;  %v1511_v6 = vld [vmem:[#allocation29_spill] sm:$0xff]  ;;  %s614_s3 = sshll.u32 %s711_s0, 5  ;;  %s613_s24 = sshll.u32 %s711_s0, 3  ;;  %s711_s0 = sphi %s1325_s0, %s366_s0   ;;  %v707_v19 = vphi %v1323_v19, %v524_v19   ;;  %v703_v25 = vphi %v1321_v25, %v522_v25   ;;  %v699_v14 = vphi %v1319_v14, %v1537_v14   ;;  %v695_v20 = vphi %v1317_v20, %v1536_v20  }
  0xf6   : > { %378 = vmatpush.msra.mxu0 %v1509_v3  ;;  %398 = vmatpush.msra.mxu1 %v1510_v4  ;;  %v1512_v5 = vld [vmem:[#allocation28_spill] sm:$0xff]  ;;  %v1513_v0 = vld [vmem:[#allocation23_spill] sm:$0xff]  ;;  %v1514_v2 = vld [vmem:[#allocation25_spill] sm:$0xff]  ;;  %s373_s23 = scalar_lea.vmem [#allocation2], %s614_s3  ;;  %s527_s27 = scalar_lea.vmem %s1479_s4, %s613_s24 }
  0xf7   : > { %438 = vmatpush.msra.mxu3 %v1511_v6  ;;  %418 = vmatpush.msra.mxu2 %v1512_v5  ;;  %v1515_v1 = vld [vmem:[#allocation24_spill] sm:$0xff]  ;;  %v1516_v23 = vld [vmem:[#allocation19_spill] sm:$0xff]  ;;  %v1518_v9 = vld [vmem:[#allocation22_spill] sm:$0xff]  ;;  %s366_s0 = sadd.s32 1, %s711_s0  }
  0xf8   : > { %379 = vmatpush.msra.mxu0 %v1042_v63  ;;  %399 = vmatpush.msra.mxu1 %v1513_v0  ;;  %v1517_v24 = vld [vmem:[#allocation20_spill] sm:$0xff]  ;;  %v1519_v12 = vld [vmem:[#allocation21_spill] sm:$0xff]  ;;  %v1520_v8 = vld [vmem:[#allocation15_spill] sm:$0xff]  ;;  %p363_p0 = scmp.ge.s32.totalorder %s366_s0, 8  }
  0xf9   : > { %439 = vmatpush.msra.mxu3 %v1514_v2  ;;  %419 = vmatpush.msra.mxu2 %v1515_v1  ;;  %v1521_v11 = vld [vmem:[#allocation16_spill] sm:$0xff]  ;;  %v1522_v26 = vld [vmem:[#allocation18_spill] sm:$0xff]  ;;  %v1523_v18 = vld [vmem:[#allocation17_spill] sm:$0xff] }
  0xfa   : > { %380 = vmatpush.msra.mxu0 %v1022_v59  ;;  %400 = vmatpush.msra.mxu1 %v1027_v60  ;;  %v1524_v10 = vld [vmem:[#allocation11_spill] sm:$0xff]  ;;  %v1525_v7 = vld [vmem:[#allocation12_spill] sm:$0xff]  ;;  %v1526_v16 = vld [vmem:[#allocation14_spill] sm:$0xff] }
  0xfb   : > { %440 = vmatpush.msra.mxu3 %v1037_v62  ;;  %420 = vmatpush.msra.mxu2 %v1032_v61  ;;  %v1527_v13 = vld [vmem:[#allocation13_spill] sm:$0xff]  ;;  %v1528_v15 = vld [vmem:[#allocation7_spill] sm:$0xff]  ;;  %v1529_v21 = vld [vmem:[#allocation8_spill] sm:$0xff] }
  0xfc   : > { %381 = vmatpush.msra.mxu0 %v1002_v55  ;;  %401 = vmatpush.msra.mxu1 %v1007_v56  ;;  %v1530_v17 = vld [vmem:[#allocation10_spill] sm:$0xff]  ;;  %v1531_v22 = vld [vmem:[#allocation9_spill] sm:$0xff] }
  0xfd   : > { %441 = vmatpush.msra.mxu3 %v1017_v58  ;;  %421 = vmatpush.msra.mxu2 %v1012_v57  ;;  %v376_v1 = vld [vmem:[%s373_s23 + $0x10] sm:$0xff] }
  0xfe   : > { %382 = vmatpush.msra.mxu0 %v982_v51  ;;  %402 = vmatpush.msra.mxu1 %v987_v52 }
  0xff   : > { %442 = vmatpush.msra.mxu3 %v997_v54  ;;  %422 = vmatpush.msra.mxu2 %v992_v53 }
 0x100   : > { %383 = vmatpush.msra.mxu0 %v962_v47  ;;  %403 = vmatpush.msra.mxu1 %v967_v48 }
 0x101   : > { %443 = vmatpush.msra.mxu3 %v977_v50  ;;  %423 = vmatpush.msra.mxu2 %v972_v49 }
 0x102   : > { %384 = vmatpush.msra.mxu0 %v942_v43  ;;  %404 = vmatpush.msra.mxu1 %v947_v44 }
 0x103   : > { %444 = vmatpush.msra.mxu3 %v957_v46  ;;  %424 = vmatpush.msra.mxu2 %v952_v45 }
 0x104   : > { %385 = vmatpush.msra.mxu0 %v922_v39  ;;  %405 = vmatpush.msra.mxu1 %v927_v40 }
 0x105   : > { %445 = vmatpush.msra.mxu3 %v937_v42  ;;  %425 = vmatpush.msra.mxu2 %v932_v41 }
 0x106   : > { %386 = vmatpush.msra.mxu0 %v902_v35  ;;  %406 = vmatpush.msra.mxu1 %v907_v36 }
 0x107   : > { %446 = vmatpush.msra.mxu3 %v917_v38  ;;  %426 = vmatpush.msra.mxu2 %v912_v37 }
 0x108   : > { %387 = vmatpush.msra.mxu0 %v882_v31  ;;  %407 = vmatpush.msra.mxu1 %v887_v32 }
 0x109   : > { %447 = vmatpush.msra.mxu3 %v897_v34  ;;  %427 = vmatpush.msra.mxu2 %v892_v33 }
 0x10a   : > { %388 = vmatpush.msra.mxu0 %v862_v27  ;;  %408 = vmatpush.msra.mxu1 %v867_v28 }
 0x10b   : > { %448 = vmatpush.msra.mxu3 %v877_v30  ;;  %428 = vmatpush.msra.mxu2 %v872_v29 }
 0x10c   : > { %389 = vmatpush.msra.mxu0 %v1516_v23  ;;  %409 = vmatpush.msra.mxu1 %v1517_v24 }
 0x10d   : > { %449 = vmatpush.msra.mxu3 %v1518_v9  ;;  %429 = vmatpush.msra.mxu2 %v1519_v12  ;;  %v1532_v9 = vld [vmem:[#allocation3_spill] sm:$0xff]  ;;  %v1533_v12 = vld [vmem:[#allocation4_spill] sm:$0xff] }
 0x10e   : > { %390 = vmatpush.msra.mxu0 %v1520_v8  ;;  %410 = vmatpush.msra.mxu1 %v1521_v11  ;;  %v1534_v8 = vld [vmem:[#allocation6_spill] sm:$0xff]  ;;  %v1535_v11 = vld [vmem:[#allocation5_spill] sm:$0xff] }
 0x10f   : > { %450 = vmatpush.msra.mxu3 %v1522_v26  ;;  %430 = vmatpush.msra.mxu2 %v1523_v18  ;;  %v374_v26 = vld [vmem:[%s373_s23] sm:$0xff]  ;;  %v375_v18 = vld [vmem:[%s373_s23 + $0x8] sm:$0xff] }
 0x110   : > { %391 = vmatpush.msra.mxu0 %v1524_v10  ;;  %411 = vmatpush.msra.mxu1 %v1525_v7 }
 0x111   : > { %451 = vmatpush.msra.mxu3 %v1526_v16  ;;  %431 = vmatpush.msra.mxu2 %v1527_v13 }
 0x112   : > { %392 = vmatpush.msra.mxu0 %v1528_v15  ;;  %412 = vmatpush.msra.mxu1 %v1529_v21 }
 0x113   : > { %452 = vmatpush.msra.mxu3 %v1530_v17  ;;  %432 = vmatpush.msra.mxu2 %v1531_v22  ;;  %v377_v17 = vld [vmem:[%s373_s23 + $0x18] sm:$0xff] }
 0x114   : > { %393 = vmatpush.msra.mxu0 %v1532_v9  ;;  %413 = vmatpush.msra.mxu1 %v1533_v12 }
 0x115   : > { %453 = vmatpush.msra.mxu3 %v1534_v8  ;;  %394 = vmatmul.f32.vlgmr.msra.gmra.mxu0 %v707_v19 }
 0x116   : > { %414 = vmatmul.f32.vlgmr.msra.gmra.mxu1 %v707_v19  ;;  %454 = vmatmul.f32.vlgmr.msra.gmra.mxu3 %v707_v19 }
 0x117   : > { %433 = vmatpush.msra.mxu2 %v1535_v11 }
 0x118   : > { %434 = vmatmul.f32.vlgmr.msra.gmra.mxu2 %v707_v19 }
 0x192   : > { %v395_v10 = vpop.f32.mrf.mxu0 }
 0x193   : > { %v458_v7 = vadd.f32 %v395_v10, %v374_v26  ;;  %v415_v16 = vpop.f32.mrf.mxu1 }
 0x194   : > { %v459_v13 = vadd.f32 %v415_v16, %v375_v18 }
 0x195   : > { %v610_v15 = vmul.f32 -1.442695, %v458_v7 }
 0x196   : > { %v611_v21 = vmul.f32 -1.442695, %v459_v13 }
 0x197   : > { %655 = vpow2.f32 %v610_v15 }
 0x198   : > { %657 = vpow2.f32 %v611_v21 }
 0x199   : > { %v455_v22 = vpop.f32.mrf.mxu3 }
 0x19a   : > { %v461_v9 = vadd.f32 %v455_v22, %v377_v17 }
 0x19b   : > { %v435_v2 = vpop.f32.mrf.mxu2 }
 0x19c   : > { %v612_v12 = vmul.f32 -1.442695, %v461_v9  ;;  %v460_v10 = vadd.f32 %v435_v2, %v376_v1 }
 0x19d   : > { %v656_v8 = vpop.eup %655 }
 0x19e   : > { %v658_v11 = vpop.eup %657  ;;  %v465_v0 = vadd.f32 1.0, %v656_v8  ;;  %659 = vpow2.f32 %v612_v12 }
 0x19f   : > { %v484_v19 = vadd.f32 1.0, %v658_v11 }
 0x1a0   : > { %661 = vrcp.f32 %v465_v0  ;;  %v477_v22 = vand.u32 2147483648, %v465_v0  ;;  %v475_v12 = vand.u32 2147483647, %v465_v0  ;;  %vm471_vm2 = vweird.f32 %v465_v0 }
 0x1a1   : > { %663 = vrcp.f32 %v484_v19  ;;  %v496_v9 = vand.u32 2147483648, %v484_v19  ;;  %v494_v3 = vand.u32 2147483647, %v484_v19  ;;  %vm490_vm3 = vweird.f32 %v484_v19 }
 0x1a2   : > { %vm476_vm6 = vcmp.eq.f32.partialorder %v475_v12, 8.507059e+37 }
 0x1a3   : > { %vm495_vm7 = vcmp.eq.f32.partialorder %v494_v3, 8.507059e+37 }
 0x1a4   : > { %v660_v26 = vpop.eup %659 }
 0x1a5   : > { %v504_v18 = vadd.f32 1.0, %v660_v26  ;;  %v478_v26 = vor.u32 1.1754944e-38, %v477_v22 }
 0x1a6   : > { %v662_v7 = vpop.eup %661 }
 0x1a7   : > { %v664_v16 = vpop.eup %663  ;;  %v467_v13 = vmul.f32 %v662_v7, %v465_v0  ;;  %665 = vrcp.f32 %v504_v18  ;;  %vm472_vm0 = vweird.f32 %v662_v7  ;;  %v516_v22 = vand.u32 2147483648, %v504_v18 }
 0x1a8   : > { %v486_v15 = vmul.f32 %v664_v16, %v484_v19  ;;  %667 = vtanh.f32 %v460_v10  ;;  %vm491_vm1 = vweird.f32 %v664_v16  ;;  %vm473_vm4 = vmor %vm471_vm2, %vm472_vm0  ;;  %v497_v10 = vor.u32 1.1754944e-38, %v496_v9 }
 0x1a9   : > { %v468_v21 = vsub.f32 1.0, %v467_v13  ;;  %vm492_vm5 = vmor %vm490_vm3, %vm491_vm1  ;;  %vm510_vm9 = vweird.f32 %v504_v18 }
 0x1aa   : > { %v487_v17 = vsub.f32 1.0, %v486_v15 }
 0x1ab   : > { %v469_v8 = vmul.f32 %v662_v7, %v468_v21 }
 0x1ac   : > { %v488_v11 = vmul.f32 %v664_v16, %v487_v17 }
 0x1ad   : > { %v666_v4 = vpop.eup %665  ;;  %v470_v5 = vadd.f32 %v662_v7, %v469_v8 }
 0x1ae   : > { %v668_v1 = vpop.eup %667  ;;  %v506_v2 = vmul.f32 %v666_v4, %v504_v18  ;;  %v489_v6 = vadd.f32 %v664_v16, %v488_v11  ;;  %vm511_vm8 = vweird.f32 %v666_v4  ;;  %v514_v11 = vand.u32 2147483647, %v504_v18 }
 0x1af   : > { %v474_v13 = vsel %vm473_vm4, %v662_v7, %v470_v5  ;;  %vm512_vm10 = vmor %vm510_vm9, %vm511_vm8  ;;  %v517_v7 = vor.u32 1.1754944e-38, %v516_v22 }
 0x1b0   : > { %v479_v15 = vsel %vm476_vm6, %v478_v26, %v474_v13  ;;  %v493_v21 = vsel %vm492_vm5, %v664_v16, %v489_v6  ;;  %v507_v17 = vsub.f32 1.0, %v506_v2  ;;  %vm515_vm11 = vcmp.eq.f32.partialorder %v514_v11, 8.507059e+37 }
 0x1b1   : > { %v498_v23 = vsel %vm495_vm7, %v497_v10, %v493_v21  ;;  %v521_v24 = vmul.f32 %v668_v1, %v479_v15 }
 0x1b2   : > { %v520_v8 = vmul.f32 %v703_v25, %v498_v23  ;;  %v508_v0 = vmul.f32 %v666_v4, %v507_v17 }
 0x1b4   : > { %v522_v25 = vadd.f32 %v521_v24, %v520_v8   ;;  %v509_v19 = vadd.f32 %v666_v4, %v508_v0 }
 0x1b6   : > { %669 = vtanh.f32 %v522_v25  ;;  %v513_v5 = vsel %vm512_vm10, %v666_v4, %v509_v19 }
 0x1b7   : > { %v518_v3 = vsel %vm515_vm11, %v517_v7, %v513_v5 }
 0x1bc   : > { %v670_v6 = vpop.eup %669 }
 0x1bd   : > { %v524_v19 = vmul.f32 %v670_v6, %v518_v3  }
 0x1bf   : > { %529 = vadd.xlane.f32.xlu0 %v524_v19  ;;  %528 = vst [vmem:[%s527_s27] sm:$0xff] %v524_v19  ;;  %v532_v23 = vmul.f32 %v524_v19, %v524_v19 }
 0x1c6   :  { %v551_v17 = vld [vmem:[%s1479_s4] sm:$0xff] (%p363_p0)  ;;  %v552_v8 = vld [vmem:[%s1479_s4 + $0x8] sm:$0xff] (%p363_p0)  ;;  %v553_v27 = vld [vmem:[%s1479_s4 + $0x10] sm:$0xff] (%p363_p0) }
 0x1c7   : > { %533 = vadd.xlane.f32.xlu0 %v532_v23  ;;  %v554_v28 = vld [vmem:[%s1479_s4 + $0x18] sm:$0xff] (%p363_p0)  ;;  %v555_v30 = vld [vmem:[%s1479_s4 + $0x20] sm:$0xff] (%p363_p0)  ;;  %v556_v34 = vld [vmem:[%s1479_s4 + $0x28] sm:$0xff] (%p363_p0) }
 0x1c8   :  { %v557_v37 = vld [vmem:[%s1479_s4 + $0x30] sm:$0xff] (%p363_p0)  ;;  %v558_v39 = vld [vmem:[%s1479_s4 + $0x38] sm:$0xff] (%p363_p0) }
 0x232   : > { %v530_v24 = vpop.xlane.xlu0 %529 }
 0x233   : > { %v531_v16 = vadd.f32 %v699_v14, %v530_v24  }
 0x235   : > { %v1537_v14 = vmov %v531_v16  ;;  %v536_v4 = vmul.f32 (%p363_p0), 0.00390625, %v531_v16 }
 0x237   :  { %v538_v1 = vmul.f32 (%p363_p0), %v536_v4, %v536_v4  ;;  %v559_v31 = vsub.f32 (%p363_p0), %v551_v17, %v536_v4  ;;  %v560_v32 = vsub.f32 (%p363_p0), %v552_v8, %v536_v4  ;;  %v561_v33 = vsub.f32 (%p363_p0), %v553_v27, %v536_v4 }
 0x238   :  { %v562_v36 = vsub.f32 (%p363_p0), %v554_v28, %v536_v4  ;;  %v563_v38 = vsub.f32 (%p363_p0), %v555_v30, %v536_v4  ;;  %v564_v41 = vsub.f32 (%p363_p0), %v556_v34, %v536_v4  ;;  %v565_v45 = vsub.f32 (%p363_p0), %v557_v37, %v536_v4 }
 0x239   :  { %365 = sbr.rel (!%p363_p0) target bundleno = 245 (0xf5), region = 46  ;;  %v566_v47 = vsub.f32 (%p363_p0), %v558_v39, %v536_v4 }
 0x23a   : > { %v534_v18 = vpop.xlane.xlu0 %533 }
 0x23b   : > { %v535_v9 = vadd.f32 %v695_v20, %v534_v18  }
 0x23d   : > { %v1536_v20 = vmov %v535_v9  ;;  %v537_v12 = vmul.f32 (%p363_p0), 0.00390625, %v535_v9 }
 0x23f   :  { %v539_v2 = vsub.f32 %v537_v12, %v538_v1 }
 0x241   :  { %v540_v26 = vadd.f32 1e-05, %v539_v2 }
 0x243   :  { %671 = vrsqrt.f32 %v540_v26  ;;  %vm547_vm12 = vweird.f32 %v540_v26 }
 0x249   :  { %v672_v10 = vpop.eup %671 }
 0x24a   :  { %v542_v13 = vmul.f32 %v672_v10, %v540_v26  ;;  %vm548_vm13 = vweird.f32 %v672_v10 }
 0x24b   :  { %vm549_vm14 = vmor %vm547_vm12, %vm548_vm13 }
 0x24c   :  { %v543_v15 = vmul.f32 %v672_v10, %v542_v13 }
 0x24e   :  { %v544_v21 = vmul.f32 0.5, %v543_v15 }
 0x250   :  { %v545_v29 = vsub.f32 1.5, %v544_v21 }
 0x252   :  { %v546_v35 = vmul.f32 %v672_v10, %v545_v29 }
 0x254   :  { %v550_v40 = vsel %vm549_vm14, %v672_v10, %v546_v35 }
 0x255   :  { %v567_v42 = vmul.f32 %v559_v31, %v550_v40  ;;  %v568_v43 = vmul.f32 %v560_v32, %v550_v40  ;;  %v569_v44 = vmul.f32 %v561_v33, %v550_v40  ;;  %v570_v46 = vmul.f32 %v562_v36, %v550_v40 }
 0x256   :  { %v571_v48 = vmul.f32 %v563_v38, %v550_v40  ;;  %v572_v49 = vmul.f32 %v564_v41, %v550_v40  ;;  %v573_v50 = vmul.f32 %v565_v45, %v550_v40  ;;  %v574_v51 = vmul.f32 %v566_v47, %v550_v40 }
 0x257   :  { %575 = vst [vmem:[%s1479_s4] sm:$0xff] %v567_v42 }
 0x258   :  { %576 = vst [vmem:[%s1479_s4 + $0x8] sm:$0xff] %v568_v43 }
 0x259   :  { %577 = vst [vmem:[%s1479_s4 + $0x10] sm:$0xff] %v569_v44 }
 0x25a   :  { %578 = vst [vmem:[%s1479_s4 + $0x18] sm:$0xff] %v570_v46 }
 0x25b   :  { %579 = vst [vmem:[%s1479_s4 + $0x20] sm:$0xff] %v571_v48 }
 0x25c   :  { %580 = vst [vmem:[%s1479_s4 + $0x28] sm:$0xff] %v572_v49 }
 0x25d   :  { %581 = vst [vmem:[%s1479_s4 + $0x30] sm:$0xff] %v573_v50 }
 0x25e   :  { %582 = vst [vmem:[%s1479_s4 + $0x38] sm:$0xff] %v574_v51 }

</bundles_post_ra>
